<compile_context>
chip_gen: v6e
topology: v6e:2x2x1
jax: 0.10.0
libtpu: 0.0.40
codegen_flags: <defaults>
</compile_context>

<pallas_src>
import random
from functools import lru_cache

import jax
import jax.numpy as jnp
from jax import lax
from jax.experimental import pallas as pl
from jax.experimental.pallas import tpu as pltpu

_LANES = 128
# Resident fast path cap: 4096 rows = 2 MiB per f32 slab; with double-buffered
# in/out blocks + the noise scratch + elementwise temporaries the peak stays
# well under the 32 MiB scoped-VMEM limit requested below on all generations.
_MAX_RESIDENT_ROWS = 4096
# Streaming fallback tile: 2048 rows = 1 MiB per f32 buffer (was 512).
_STREAM_TILE_ROWS = 2048
_VMEM_LIMIT_BYTES = 32 * 1024 * 1024


def _round_up(x, m):
    return ((x + m - 1) // m) * m


def _per_lane_scale(es_lane, en_lane, gain, num_channels):
    """(1,128) per-lane energies -> (1,128) per-lane scale.

    Lane l of the flat time-major layout holds channel l % num_channels
    (num_channels divides 128), so the per-channel reduction is a tiny masked
    sum over a single (1,128) vector.
    scale_c = sqrt(Es_c) * rsqrt(En_c) * 10**(-snr_db/20); zero-energy noise
    yields scale 0 instead of inf/NaN.
    """
    lane = lax.broadcasted_iota(jnp.int32, (1, _LANES), 1)
    scale = jnp.zeros((1, _LANES), jnp.float32)
    for c in range(num_channels):          # static, tiny loop (C | 128)
        m = (lane % num_channels) == c
        es_c = jnp.sum(jnp.where(m, es_lane, 0.0), keepdims=True)
        en_c = jnp.sum(jnp.where(m, en_lane, 0.0), keepdims=True)
        s_c = jnp.where(en_c > 0.0,
                        jnp.sqrt(es_c) * lax.rsqrt(en_c) * gain, 0.0)
        scale = jnp.where(m, s_c, scale)
    return scale


# ---------------------------------------------------------------------------
# Resident fast path: whole slab in VMEM, single grid step, 3N HBM bytes.
# ---------------------------------------------------------------------------
def _make_resident_kernel(rows, tail_rows, num_channels):
    head_rows = rows - tail_rows   # wrapper guarantees the head is fully valid

    def kernel(sinfo, gain_ref, speech_ref, noise_hbm, out_ref, nbuf, nsem):
        # Scalar (SMEM) reads first, before any DMA wait.
        start_row = sinfo[0]
        n_valid = sinfo[1]
        gain = gain_ref[0]

        # One DMA of the whole noise window into VMEM (noise read once).
        cp = pltpu.make_async_copy(
            noise_hbm.at[pl.ds(start_row, rows), :], nbuf, nsem.at[0])
        cp.start()

        # Speech energy: speech is zero-padded host-side -> no mask needed.
        speech = speech_ref[...].astype(jnp.float32)
        es_lane = jnp.sum(speech * speech, axis=0, keepdims=True)

        cp.wait()

        # Noise energy: head rows are always fully valid (bucketing invariant),
        # only the last `tail_rows` rows need the per-element validity mask.
        if head_rows > 0:
            nz_h = nbuf[0:head_rows, :].astype(jnp.float32)
            en_lane = jnp.sum(nz_h * nz_h, axis=0, keepdims=True)
        else:
            en_lane = jnp.zeros((1, _LANES), jnp.float32)
        nz_t = nbuf[head_rows:rows, :].astype(jnp.float32)
        row = lax.broadcasted_iota(jnp.int32, (tail_rows, _LANES), 0)
        lane = lax.broadcasted_iota(jnp.int32, (tail_rows, _LANES), 1)
        flat = (head_rows + row) * _LANES + lane
        nz_t = jnp.where(flat < n_valid, nz_t, 0.0)
        en_lane = en_lane + jnp.sum(nz_t * nz_t, axis=0, keepdims=True)

        scale = _per_lane_scale(es_lane, en_lane, gain, num_channels)
        # Values in the padded tail are don't-care (wrapper trims them).
        out_ref[...] = (speech + scale * nbuf[...].astype(jnp.float32)
                        ).astype(out_ref.dtype)

    return kernel


@lru_cache(maxsize=None)
def _build_resident_call(rows, tail_rows, num_channels, speech_dtype, noise_dtype):
    kernel = _make_resident_kernel(rows, tail_rows, num_channels)
    grid_spec = pltpu.PrefetchScalarGridSpec(
        num_scalar_prefetch=1,             # sinfo = [start_row, n_valid] -> SMEM
        grid=(1,),
        in_specs=[
            pl.BlockSpec(memory_space=pltpu.MemorySpace.SMEM),       # gain
            pl.BlockSpec((rows, _LANES), lambda i, sinfo: (0, 0)),   # speech slab
            pl.BlockSpec(memory_space=pl.ANY),                       # noise (HBM)
        ],
        out_specs=pl.BlockSpec((rows, _LANES), lambda i, sinfo: (0, 0)),
        scratch_shapes=[
            pltpu.VMEM((rows, _LANES), noise_dtype),    # resident noise window
            pltpu.SemaphoreType.DMA((1,)),
        ],
    )
    return pl.pallas_call(
        kernel,
        out_shape=jax.ShapeDtypeStruct((rows, _LANES), speech_dtype),
        grid_spec=grid_spec,
        compiler_params=pltpu.CompilerParams(
            dimension_semantics=("arbitrary",),
            vmem_limit_bytes=_VMEM_LIMIT_BYTES),
    )


# ---------------------------------------------------------------------------
# Streaming fallback: two-phase (energy, apply) tiled pipeline for clips that
# do not fit VMEM.  5N HBM bytes, but unbounded clip length.
# ---------------------------------------------------------------------------
def _make_streaming_kernel(num_channels, num_tiles, tile_rows):
    tile_elems = tile_rows * _LANES

    def kernel(sinfo, gain_ref, speech_ref, noise_hbm, out_ref,
               es_acc, en_acc, scale_acc, nbuf, nsem):
        p = pl.program_id(0)                # 0: energy pass, 1: apply pass
        t = pl.program_id(1)                # time tile
        cur = p * num_tiles + t             # linear grid step
        slot = cur % 2
        # Scalar reads / address math before any DMA wait (.wait() breaks the
        # SMEM store->load forwarding on the scalar path).
        start_row = sinfo[0]
        n_valid = sinfo[1]
        tile_base = t * tile_elems

        def noise_dma(tile_idx, buf_slot):
            row0 = start_row + tile_idx * tile_rows
            return pltpu.make_async_copy(
                noise_hbm.at[pl.ds(row0, tile_rows), :],
                nbuf.at[buf_slot], nsem.at[buf_slot])

        @pl.when(cur == 0)
        def _prime():
            noise_dma(0, 0).start()
            es_acc[...] = jnp.zeros_like(es_acc)
            en_acc[...] = jnp.zeros_like(en_acc)

        @pl.when(cur + 1 < 2 * num_tiles)   # prefetch next step's noise tile
        def _prefetch():
            nxt = cur + 1
            noise_dma(nxt % num_tiles, nxt % 2).start()

        noise_dma(t, slot).wait()

        speech = speech_ref[...].astype(jnp.float32)
        noise = nbuf[slot].astype(jnp.float32)

        # ---- phase 0: energy accumulation ---------------------------------
        @pl.when(p == 0)
        def _acc_speech():                  # speech zero-padded -> never masked
            es_acc[...] += jnp.sum(speech * speech, axis=0, keepdims=True)

        @pl.when(jnp.logical_and(p == 0, tile_base + tile_elems <= n_valid))
        def _acc_noise_interior():          # fully valid tile: unmasked
            en_acc[...] += jnp.sum(noise * noise, axis=0, keepdims=True)

        @pl.when(jnp.logical_and(p == 0, tile_base + tile_elems > n_valid))
        def _acc_noise_boundary():          # only the boundary tile pays a mask
            row = lax.broadcasted_iota(jnp.int32, (tile_rows, _LANES), 0)
            lane = lax.broadcasted_iota(jnp.int32, (tile_rows, _LANES), 1)
            valid = (tile_base + row * _LANES + lane) < n_valid
            nz = jnp.where(valid, noise, 0.0)
            en_acc[...] += jnp.sum(nz * nz, axis=0, keepdims=True)

        # ---- phase 1, first tile: per-lane scale ---------------------------
        @pl.when(jnp.logical_and(p == 1, t == 0))
        def _finalize():
            scale_acc[...] = _per_lane_scale(es_acc[...], en_acc[...],
                                             gain_ref[0], num_channels)

        # ---- phase 1: apply -------------------------------------------------
        @pl.when(p == 1)
        def _apply():
            out_ref[...] = (speech + scale_acc[...] * noise).astype(out_ref.dtype)

    return kernel


@lru_cache(maxsize=None)
def _build_streaming_call(tile_rows, num_tiles, num_channels,
                          speech_dtype, noise_dtype):
    rows = tile_rows * num_tiles
    kernel = _make_streaming_kernel(num_channels, num_tiles, tile_rows)
    grid_spec = pltpu.PrefetchScalarGridSpec(
        num_scalar_prefetch=1,
        grid=(2, num_tiles),
        in_specs=[
            pl.BlockSpec(memory_space=pltpu.MemorySpace.SMEM),               # gain
            pl.BlockSpec((tile_rows, _LANES), lambda p, t, sinfo: (t, 0)),   # speech
            pl.BlockSpec(memory_space=pl.ANY),                               # noise
        ],
        # NOTE: output block index p*t keeps block 0 resident (and unwritten)
        # through all of phase 0; this is only correct because phase-1 t=0
        # fully overwrites it before the first writeback (the block index
        # first changes at (p=1, t=1)).  Do not reorder the grid without
        # revisiting this.
        out_specs=pl.BlockSpec((tile_rows, _LANES),
                               lambda p, t, sinfo: (p * t, 0)),
        scratch_shapes=[
            pltpu.VMEM((1, _LANES), jnp.float32),               # speech energy
            pltpu.VMEM((1, _LANES), jnp.float32),               # noise energy
            pltpu.VMEM((1, _LANES), jnp.float32),               # per-lane scale
            pltpu.VMEM((2, tile_rows, _LANES), noise_dtype),    # noise dbl buffer
            pltpu.SemaphoreType.DMA((2,)),
        ],
    )
    return pl.pallas_call(
        kernel,
        out_shape=jax.ShapeDtypeStruct((rows, _LANES), speech_dtype),
        grid_spec=grid_spec,
        compiler_params=pltpu.CompilerParams(
            # TODO(synk): on v7x, split into an energy pass + a "parallel"
            # apply pass so both TensorCores are used; the fused
            # reduction + manual-DMA chain here must stay serial.
            dimension_semantics=("arbitrary", "arbitrary"),
            vmem_limit_bytes=_VMEM_LIMIT_BYTES),
    )


# ---------------------------------------------------------------------------
# Module wrapper (forward-pass semantics of the PyTorch AddNoise).
# ---------------------------------------------------------------------------
class AddNoise:
    """JAX/Pallas port of the PyTorch AddNoise augmentation.

    The noise waveform is supplied in torchaudio.load() layout, i.e.
    (channels, num_samples), and is converted once at construction time into a
    flat, time-major, lane-aligned (rows, 128) buffer that stays in HBM.
    # TODO(synk): torchaudio.load(noise_filename) has no Pallas/JAX
    # equivalent; an in-memory waveform stands in for the loaded file.
    """

    def __init__(self, noise=None, snr_target=None, *,
                 noise_dtype=jnp.float32,
                 max_resident_rows=_MAX_RESIDENT_ROWS,
                 stream_tile_rows=_STREAM_TILE_ROWS):
        # `is not None` so snr_target=0 dB is honoured.
        self.snr_levels = ([snr_target] if snr_target is not None
                           else [-5, 0, 5, 10, 15, 20, 999999])
        self.max_resident_rows = int(max_resident_rows)
        self.stream_tile_rows = int(stream_tile_rows)
        self._last_draw = None
        if noise is None:
            self.noise_flat = None
            return
        noise = jnp.asarray(noise, dtype=jnp.float32)        # (C, noise_len)
        c, noise_len = noise.shape
        if _LANES % c != 0:
            # TODO(synk): general channel counts need a per-element channel map.
            raise NotImplementedError("channel count must divide 128")
        flat = noise.T.reshape(-1)                           # time-major flat
        # Pad with extra zero rows so full-tile / full-slab DMAs that overrun
        # the valid window (by at most one bucket or one tile) stay in bounds.
        extra_rows = max(512, self.stream_tile_rows)
        total = _round_up(flat.shape[0], _LANES) + extra_rows * _LANES
        flat = jnp.pad(flat, (0, total - flat.shape[0]))
        # Optionally store the noise at reduced precision (halves noise-read
        # bytes; mainly relevant on v5e's lower HBM bandwidth).
        self.noise_flat = flat.astype(noise_dtype).reshape(-1, _LANES)
        self.num_channels = c
        self.noise_len = noise_len

    def forward(self, speech):
        # speech: (T, C), same convention as the PyTorch module; returns (T, C).
        if self.noise_flat is None:
            return speech
        t_len, c = speech.shape
        if c != self.num_channels:
            raise ValueError("speech/noise channel mismatch")
        if self.noise_len < t_len:
            raise ValueError("noise waveform is shorter than the speech input")

        n = t_len * c                                     # valid flat elements
        valid_rows = -(-n // _LANES)

        # Host-side random draws (matches the torch module's use of `random`).
        # The window start is quantised to one flat 128-element row
        # (= 128//C samples) so it stays lane-aligned with the speech view.
        start_row = random.randint(0, (self.noise_len * c - n) // _LANES)
        snr_db = float(random.choice(self.snr_levels))
        gain = 10.0 ** (-snr_db / 20.0)   # underflows to 0.0 for snr=999999
        self._last_draw = (start_row, snr_db)

        # Bucket the padded row count (<= ~25% padding) so a handful of kernel
        # binaries cover all clip lengths; the exact length is the runtime
        # scalar n_valid, so lengths within a bucket share one compilation.
        gran = max(8, min(512, pl.next_power_of_2(valid_rows) // 4))
        rows = _round_up(valid_rows, gran)
        use_resident = rows <= self.max_resident_rows
        if not use_resident:
            tile_rows = self.stream_tile_rows
            rows = _round_up(valid_rows, tile_rows)
            num_tiles = rows // tile_rows

        # Lane-dense flat view of the (T, C) waveform: a pure reshape (no
        # transpose); zero-padded only when the bucket requires it.
        flat = speech.reshape(-1)
        pad = rows * _LANES - n
        if pad:
            flat = jnp.pad(flat, (0, pad))
        speech2d = flat.reshape(rows, _LANES)

        sinfo = jnp.array([start_row, n], dtype=jnp.int32)
        gain_arr = jnp.array([gain], dtype=jnp.float32)
        sp_dt = jnp.dtype(speech2d.dtype)
        nz_dt = jnp.dtype(self.noise_flat.dtype)

        if use_resident:
            call = _build_resident_call(rows, gran, c, sp_dt, nz_dt)
        else:
            call = _build_streaming_call(tile_rows, num_tiles, c, sp_dt, nz_dt)
        out2d = call(sinfo, gain_arr, speech2d, self.noise_flat)

        out_flat = out2d.reshape(-1)
        if pad:
            out_flat = out_flat[:n]
        return out_flat.reshape(t_len, c)

    __call__ = forward


def _reference_add_noise(speech_tc, noise_cm, start_sample, snr_db):
    """torchaudio.functional.add_noise reference (channel-major math)."""
    t_len, _ = speech_tc.shape
    sp = speech_tc.T.astype(jnp.float32)                             # (C, T)
    nz = noise_cm[:, start_sample:start_sample + t_len].astype(jnp.float32)
    es = jnp.sum(sp * sp, axis=-1, keepdims=True)
    en = jnp.sum(nz * nz, axis=-1, keepdims=True)
    snr_orig = 10.0 * (jnp.log10(es) - jnp.log10(en))
    scale = 10.0 ** ((snr_orig - snr_db) / 20.0)
    return (sp + scale * nz).T.astype(speech_tc.dtype)


if __name__ == "__main__":
    random.seed(0)
    key = jax.random.PRNGKey(0)
    k_speech, k_noise = jax.random.split(key)

    T, C, NOISE_LEN = 1000, 2, 4096          # small synthetic 16 kHz waveforms
    speech = jax.random.normal(k_speech, (T, C), dtype=jnp.float32)
    noise_wave = 0.5 * jax.random.normal(k_noise, (C, NOISE_LEN), dtype=jnp.float32)

    # 1) Resident fast path, random SNR level.
    mod = AddNoise(noise=noise_wave, snr_target=None)
    noisy = jax.block_until_ready(mod(speech))
    start_row, snr_db = mod._last_draw
    ref = _reference_add_noise(speech, noise_wave, start_row * (_LANES // C), snr_db)
    assert noisy.shape == speech.shape and noisy.dtype == speech.dtype
    assert jnp.allclose(noisy, ref, atol=1e-4, rtol=1e-4), \
        float(jnp.max(jnp.abs(noisy - ref)))

    # 2) Fixed snr_target=0 dB (regression test for the old falsy-zero bug).
    mod0 = AddNoise(noise=noise_wave, snr_target=0)
    assert mod0.snr_levels == [0]
    noisy0 = jax.block_until_ready(mod0(speech))
    sr0, snr0 = mod0._last_draw
    ref0 = _reference_add_noise(speech, noise_wave, sr0 * (_LANES // C), snr0)
    assert jnp.allclose(noisy0, ref0, atol=1e-4, rtol=1e-4), \
        float(jnp.max(jnp.abs(noisy0 - ref0)))

    # 3) Streaming (tiled two-phase) fallback, forced with tiny tiles so it is
    #    exercised at test size (also hits the boundary-tile energy mask).
    mods = AddNoise(noise=noise_wave, snr_target=5,
                    max_resident_rows=0, stream_tile_rows=8)
    noisys = jax.block_until_ready(mods(speech))
    srs, snrs = mods._last_draw
    refs = _reference_add_noise(speech, noise_wave, srs * (_LANES // C), snrs)
    assert jnp.allclose(noisys, refs, atol=1e-4, rtol=1e-4), \
        float(jnp.max(jnp.abs(noisys - refs)))

    # 4) noise=None pass-through.
    assert jnp.array_equal(AddNoise(noise=None)(speech), speech)

    print("KERNEL_OK")
</pallas_src>

<mosaic_0001>
module attributes {stable_mosaic.version = 11 : i64} {
  func.func @kernel(%arg0: i32, %arg1: memref<2xi32, #tpu.memory_space<smem>>, %arg2: memref<1xf32, #tpu.memory_space<smem>>, %arg3: memref<16x128xf32, #tpu.memory_space<vmem>>, %arg4: memref<2112x128xf32, #tpu.memory_space<any>>, %arg5: memref<16x128xf32, #tpu.memory_space<vmem>>, %arg6: memref<16x128xf32, #tpu.memory_space<vmem>>, %arg7: memref<1x!tpu.dma_semaphore, #tpu.memory_space<semaphore_mem>>) attributes {dimension_semantics = [#tpu.dimension_semantics<arbitrary>], iteration_bounds = array<i64: 1>, scalar_prefetch = 1 : i64, scratch_operands = 2 : i64, tpu.core_type = #tpu.core_type<tc>, window_params = [{transform_indices = @transform_0, window_bounds = array<i64: 1>}, {pipeline_mode = #tpu.pipeline_mode<synchronous>, transform_indices = @transform_1, window_bounds = array<i64: 16, 128>}, {}, {pipeline_mode = #tpu.pipeline_mode<synchronous>, transform_indices = @transform_3, window_bounds = array<i64: 16, 128>}]} {
    %c0 = arith.constant 0 : index
    %0 = memref.load %arg1[%c0] : memref<2xi32, #tpu.memory_space<smem>>
    %c1 = arith.constant 1 : index
    %1 = memref.load %arg1[%c1] : memref<2xi32, #tpu.memory_space<smem>>
    %c0_0 = arith.constant 0 : index
    %2 = memref.load %arg2[%c0_0] : memref<1xf32, #tpu.memory_space<smem>>
    %c0_i32 = arith.constant 0 : i32
    %c0_i32_1 = arith.constant 0 : i32
    %3 = tpu.memref_slice %arg4[%0, %c0_i32_1] : memref<2112x128xf32, #tpu.memory_space<any>> -> memref<16x128xf32, #tpu.memory_space<any>>
    %4 = tpu.memref_slice %arg7[%c0_i32] : memref<1x!tpu.dma_semaphore, #tpu.memory_space<semaphore_mem>> -> memref<1x!tpu.dma_semaphore, #tpu.memory_space<semaphore_mem>>
    %5 = tpu.memref_squeeze %4 : memref<1x!tpu.dma_semaphore, #tpu.memory_space<semaphore_mem>> -> memref<!tpu.dma_semaphore, #tpu.memory_space<semaphore_mem>>
    tpu.enqueue_dma source(%3 : memref<16x128xf32, #tpu.memory_space<any>>) target(%arg6 : memref<16x128xf32, #tpu.memory_space<vmem>>) target_semaphore(%5 : memref<!tpu.dma_semaphore, #tpu.memory_space<semaphore_mem>>)
    %c0_2 = arith.constant 0 : index
    %c0_3 = arith.constant 0 : index
    %6 = vector.load %arg3[%c0_2, %c0_3] : memref<16x128xf32, #tpu.memory_space<vmem>>, vector<16x128xf32>
    %7 = arith.mulf %6, %6 : vector<16x128xf32>
    %cst = arith.constant dense<0.000000e+00> : vector<128xf32>
    %8 = vector.multi_reduction <add>, %7, %cst [0] : vector<16x128xf32> to vector<128xf32>
    %9 = vector.shape_cast %8 : vector<128xf32> to vector<1x128xf32>
    %c0_i32_4 = arith.constant 0 : i32
    %c0_i32_5 = arith.constant 0 : i32
    %10 = tpu.memref_slice %arg4[%0, %c0_i32_5] : memref<2112x128xf32, #tpu.memory_space<any>> -> memref<16x128xf32, #tpu.memory_space<any>>
    %11 = tpu.memref_slice %arg7[%c0_i32_4] : memref<1x!tpu.dma_semaphore, #tpu.memory_space<semaphore_mem>> -> memref<1x!tpu.dma_semaphore, #tpu.memory_space<semaphore_mem>>
    %12 = tpu.memref_squeeze %11 : memref<1x!tpu.dma_semaphore, #tpu.memory_space<semaphore_mem>> -> memref<!tpu.dma_semaphore, #tpu.memory_space<semaphore_mem>>
    tpu.wait_dma2 semaphore(%12 : memref<!tpu.dma_semaphore, #tpu.memory_space<semaphore_mem>>) src(%10 : memref<16x128xf32, #tpu.memory_space<any>>) dst(%arg6 : memref<16x128xf32, #tpu.memory_space<vmem>>)
    %c0_6 = arith.constant 0 : index
    %c0_7 = arith.constant 0 : index
    %13 = vector.load %arg6[%c0_6, %c0_7] : memref<16x128xf32, #tpu.memory_space<vmem>>, vector<8x128xf32>
    %14 = arith.mulf %13, %13 : vector<8x128xf32>
    %cst_8 = arith.constant dense<0.000000e+00> : vector<128xf32>
    %15 = vector.multi_reduction <add>, %14, %cst_8 [0] : vector<8x128xf32> to vector<128xf32>
    %16 = vector.shape_cast %15 : vector<128xf32> to vector<1x128xf32>
    %c8 = arith.constant 8 : index
    %c0_9 = arith.constant 0 : index
    %17 = vector.load %arg6[%c8, %c0_9] : memref<16x128xf32, #tpu.memory_space<vmem>>, vector<8x128xf32>
    %18 = tpu.iota {dimensions = array<i32: 0>} : vector<8x128xi32>
    %19 = tpu.iota {dimensions = array<i32: 1>} : vector<8x128xi32>
    %c8_i32 = arith.constant 8 : i32
    %20 = vector.broadcast %c8_i32 : i32 to vector<8x128xi32>
    %21 = arith.addi %20, %18 : vector<8x128xi32>
    %c128_i32 = arith.constant 128 : i32
    %22 = vector.broadcast %c128_i32 : i32 to vector<8x128xi32>
    %23 = arith.muli %21, %22 : vector<8x128xi32>
    %24 = arith.addi %23, %19 : vector<8x128xi32>
    %25 = vector.broadcast %1 : i32 to vector<8x128xi32>
    %26 = arith.cmpi slt, %24, %25 : vector<8x128xi32>
    %cst_10 = arith.constant 0.000000e+00 : f32
    %27 = vector.broadcast %cst_10 : f32 to vector<8x128xf32>
    %28 = arith.select %26, %17, %27 : vector<8x128xi1>, vector<8x128xf32>
    %29 = arith.mulf %28, %28 : vector<8x128xf32>
    %cst_11 = arith.constant dense<0.000000e+00> : vector<128xf32>
    %30 = vector.multi_reduction <add>, %29, %cst_11 [0] : vector<8x128xf32> to vector<128xf32>
    %31 = vector.shape_cast %30 : vector<128xf32> to vector<1x128xf32>
    %32 = arith.addf %16, %31 : vector<1x128xf32>
    %33 = tpu.iota {dimensions = array<i32: 1>} : vector<1x128xi32>
    %cst_12 = arith.constant 0.000000e+00 : f32
    %34 = vector.broadcast %cst_12 : f32 to vector<1x128xf32>
    %c2_i32 = arith.constant 2 : i32
    %c0_i32_13 = arith.constant 0 : i32
    %35 = arith.cmpi eq, %c2_i32, %c0_i32_13 : i32
    %c1_i32 = arith.constant 1 : i32
    %36 = arith.select %35, %c1_i32, %c2_i32 : i32
    %37 = vector.broadcast %36 : i32 to vector<1x128xi32>
    %38 = arith.remsi %33, %37 : vector<1x128xi32>
    %c0_i32_14 = arith.constant 0 : i32
    %39 = vector.broadcast %c0_i32_14 : i32 to vector<1x128xi32>
    %40 = arith.cmpi ne, %38, %39 : vector<1x128xi32>
    %c0_i32_15 = arith.constant 0 : i32
    %41 = vector.broadcast %c0_i32_15 : i32 to vector<1x128xi32>
    %42 = arith.cmpi slt, %38, %41 : vector<1x128xi32>
    %c0_i32_16 = arith.constant 0 : i32
    %43 = arith.cmpi slt, %36, %c0_i32_16 : i32
    %44 = vector.broadcast %43 : i1 to vector<1x128xi1>
    %45 = vector.broadcast %44 : vector<1x128xi1> to vector<1x128xi1>
    %46 = arith.xori %42, %45 : vector<1x128xi1>
    %47 = arith.andi %46, %40 : vector<1x128xi1>
    %48 = vector.broadcast %36 : i32 to vector<1x128xi32>
    %49 = arith.addi %38, %48 : vector<1x128xi32>
    %50 = arith.select %47, %49, %38 : vector<1x128xi1>, vector<1x128xi32>
    %c0_i32_17 = arith.constant 0 : i32
    %51 = vector.broadcast %c0_i32_17 : i32 to vector<1x128xi32>
    %52 = arith.cmpi eq, %50, %51 : vector<1x128xi32>
    %cst_18 = arith.constant 0.000000e+00 : f32
    %53 = vector.broadcast %cst_18 : f32 to vector<1x128xf32>
    %54 = arith.select %52, %9, %53 : vector<1x128xi1>, vector<1x128xf32>
    %55 = vector.shape_cast %54 : vector<1x128xf32> to vector<1x1x128xf32>
    %cst_19 = arith.constant dense<0.000000e+00> : vector<1xf32>
    %56 = vector.multi_reduction <add>, %55, %cst_19 [1, 2] : vector<1x1x128xf32> to vector<1xf32>
    %57 = vector.shape_cast %56 : vector<1xf32> to vector<1x1x1xf32>
    %58 = vector.extract %57[0, 0, 0] : f32 from vector<1x1x1xf32>
    %59 = vector.broadcast %58 : f32 to vector<1x1xf32>
    %cst_20 = arith.constant 0.000000e+00 : f32
    %60 = vector.broadcast %cst_20 : f32 to vector<1x128xf32>
    %61 = arith.select %52, %32, %60 : vector<1x128xi1>, vector<1x128xf32>
    %62 = vector.shape_cast %61 : vector<1x128xf32> to vector<1x1x128xf32>
    %cst_21 = arith.constant dense<0.000000e+00> : vector<1xf32>
    %63 = vector.multi_reduction <add>, %62, %cst_21 [1, 2] : vector<1x1x128xf32> to vector<1xf32>
    %64 = vector.shape_cast %63 : vector<1xf32> to vector<1x1x1xf32>
    %65 = vector.extract %64[0, 0, 0] : f32 from vector<1x1x1xf32>
    %66 = vector.broadcast %65 : f32 to vector<1x1xf32>
    %cst_22 = arith.constant 0.000000e+00 : f32
    %67 = vector.broadcast %cst_22 : f32 to vector<1x1xf32>
    %68 = arith.cmpf ogt, %66, %67 : vector<1x1xf32>
    %69 = math.sqrt %59 : vector<1x1xf32>
    %70 = math.rsqrt %66 : vector<1x1xf32>
    %71 = arith.mulf %69, %70 : vector<1x1xf32>
    %72 = vector.broadcast %2 : f32 to vector<1x1xf32>
    %73 = arith.mulf %71, %72 : vector<1x1xf32>
    %cst_23 = arith.constant 0.000000e+00 : f32
    %74 = vector.broadcast %cst_23 : f32 to vector<1x1xf32>
    %75 = arith.select %68, %73, %74 : vector<1x1xi1>, vector<1x1xf32>
    %76 = vector.shape_cast %75 : vector<1x1xf32> to vector<1x1xf32>
    %77 = vector.broadcast %76 : vector<1x1xf32> to vector<1x128xf32>
    %78 = arith.select %52, %77, %34 : vector<1x128xi1>, vector<1x128xf32>
    %c2_i32_24 = arith.constant 2 : i32
    %c0_i32_25 = arith.constant 0 : i32
    %79 = arith.cmpi eq, %c2_i32_24, %c0_i32_25 : i32
    %c1_i32_26 = arith.constant 1 : i32
    %80 = arith.select %79, %c1_i32_26, %c2_i32_24 : i32
    %81 = vector.broadcast %80 : i32 to vector<1x128xi32>
    %82 = arith.remsi %33, %81 : vector<1x128xi32>
    %c0_i32_27 = arith.constant 0 : i32
    %83 = vector.broadcast %c0_i32_27 : i32 to vector<1x128xi32>
    %84 = arith.cmpi ne, %82, %83 : vector<1x128xi32>
    %c0_i32_28 = arith.constant 0 : i32
    %85 = vector.broadcast %c0_i32_28 : i32 to vector<1x128xi32>
    %86 = arith.cmpi slt, %82, %85 : vector<1x128xi32>
    %c0_i32_29 = arith.constant 0 : i32
    %87 = arith.cmpi slt, %80, %c0_i32_29 : i32
    %88 = vector.broadcast %87 : i1 to vector<1x128xi1>
    %89 = vector.broadcast %88 : vector<1x128xi1> to vector<1x128xi1>
    %90 = arith.xori %86, %89 : vector<1x128xi1>
    %91 = arith.andi %90, %84 : vector<1x128xi1>
    %92 = vector.broadcast %80 : i32 to vector<1x128xi32>
    %93 = arith.addi %82, %92 : vector<1x128xi32>
    %94 = arith.select %91, %93, %82 : vector<1x128xi1>, vector<1x128xi32>
    %c1_i32_30 = arith.constant 1 : i32
    %95 = vector.broadcast %c1_i32_30 : i32 to vector<1x128xi32>
    %96 = arith.cmpi eq, %94, %95 : vector<1x128xi32>
    %cst_31 = arith.constant 0.000000e+00 : f32
    %97 = vector.broadcast %cst_31 : f32 to vector<1x128xf32>
    %98 = arith.select %96, %9, %97 : vector<1x128xi1>, vector<1x128xf32>
    %99 = vector.shape_cast %98 : vector<1x128xf32> to vector<1x1x128xf32>
    %cst_32 = arith.constant dense<0.000000e+00> : vector<1xf32>
    %100 = vector.multi_reduction <add>, %99, %cst_32 [1, 2] : vector<1x1x128xf32> to vector<1xf32>
    %101 = vector.shape_cast %100 : vector<1xf32> to vector<1x1x1xf32>
    %102 = vector.extract %101[0, 0, 0] : f32 from vector<1x1x1xf32>
    %103 = vector.broadcast %102 : f32 to vector<1x1xf32>
    %cst_33 = arith.constant 0.000000e+00 : f32
    %104 = vector.broadcast %cst_33 : f32 to vector<1x128xf32>
    %105 = arith.select %96, %32, %104 : vector<1x128xi1>, vector<1x128xf32>
    %106 = vector.shape_cast %105 : vector<1x128xf32> to vector<1x1x128xf32>
    %cst_34 = arith.constant dense<0.000000e+00> : vector<1xf32>
    %107 = vector.multi_reduction <add>, %106, %cst_34 [1, 2] : vector<1x1x128xf32> to vector<1xf32>
    %108 = vector.shape_cast %107 : vector<1xf32> to vector<1x1x1xf32>
    %109 = vector.extract %108[0, 0, 0] : f32 from vector<1x1x1xf32>
    %110 = vector.broadcast %109 : f32 to vector<1x1xf32>
    %cst_35 = arith.constant 0.000000e+00 : f32
    %111 = vector.broadcast %cst_35 : f32 to vector<1x1xf32>
    %112 = arith.cmpf ogt, %110, %111 : vector<1x1xf32>
    %113 = math.sqrt %103 : vector<1x1xf32>
    %114 = math.rsqrt %110 : vector<1x1xf32>
    %115 = arith.mulf %113, %114 : vector<1x1xf32>
    %116 = vector.broadcast %2 : f32 to vector<1x1xf32>
    %117 = arith.mulf %115, %116 : vector<1x1xf32>
    %cst_36 = arith.constant 0.000000e+00 : f32
    %118 = vector.broadcast %cst_36 : f32 to vector<1x1xf32>
    %119 = arith.select %112, %117, %118 : vector<1x1xi1>, vector<1x1xf32>
    %120 = vector.shape_cast %119 : vector<1x1xf32> to vector<1x1xf32>
    %121 = vector.broadcast %120 : vector<1x1xf32> to vector<1x128xf32>
    %122 = arith.select %96, %121, %78 : vector<1x128xi1>, vector<1x128xf32>
    %c0_37 = arith.constant 0 : index
    %c0_38 = arith.constant 0 : index
    %123 = vector.load %arg6[%c0_37, %c0_38] : memref<16x128xf32, #tpu.memory_space<vmem>>, vector<16x128xf32>
    %124 = vector.broadcast %122 : vector<1x128xf32> to vector<16x128xf32>
    %125 = arith.mulf %124, %123 : vector<16x128xf32>
    %126 = arith.addf %6, %125 : vector<16x128xf32>
    %c0_39 = arith.constant 0 : index
    %c0_40 = arith.constant 0 : index
    %127 = vector.load %arg5[%c0_39, %c0_40] : memref<16x128xf32, #tpu.memory_space<vmem>>, vector<16x128xf32>
    tpu.vector_store %arg5[%c0_39, %c0_40], %126 {strides = array<i32>} : memref<16x128xf32, #tpu.memory_space<vmem>>, vector<16x128xf32>,
    return
  }
  func.func @transform_0(%arg0: i32, %arg1: memref<2xi32, #tpu.memory_space<smem>>) -> i32 {
    %c0_i32 = arith.constant 0 : i32
    %c0_i32_0 = arith.constant 0 : i32
    return %c0_i32 : i32
  }
  func.func @transform_1(%arg0: i32, %arg1: memref<2xi32, #tpu.memory_space<smem>>) -> (i32, i32) {
    %c0_i32 = arith.constant 0 : i32
    %c0_i32_0 = arith.constant 0 : i32
    %c0_i32_1 = arith.constant 0 : i32
    return %c0_i32, %c0_i32_0 : i32, i32
  }
  func.func @transform_3(%arg0: i32, %arg1: memref<2xi32, #tpu.memory_space<smem>>) -> (i32, i32) {
    %c0_i32 = arith.constant 0 : i32
    %c0_i32_0 = arith.constant 0 : i32
    %c0_i32_1 = arith.constant 0 : i32
    return %c0_i32, %c0_i32_0 : i32, i32
  }
}

</mosaic_0001>

<bundles_post_ra>
// kernel: tpu_custom_call.1
= control target key start
LH: loop header
LB: loop body
LE: loop exit
PB: predicated region body
PF: predicated region fallthrough
CT: control target
= control target key end

     0   :  { %s315_s15 = smov [#allocation5]   ;;  %s419_s0 = inlined_call_operand.hbm [shape: s32[2], index: 0, kind: input, shape index: {}]   ;;  %s420_s1 = inlined_call_operand.<no memory space> [shape: f32[1], index: 1, kind: input, shape index: {}]   ;;  %s421_s2 = inlined_call_operand.hbm [shape: f32[16,128], index: 2, kind: input, shape index: {}]   ;;  %s422_s3 = inlined_call_operand.hbm [shape: f32[2112,128], index: 3, kind: input, shape index: {}]   ;;  %s423_s4 = inlined_call_operand.hbm [shape: f32[16,128], index: 4, kind: output, shape index: {}]  }
   0x1   :  { %10 = dma.hbm_to_smem %s419_s0, 16, %s315_s15, [#allocation4] }
   0x2   :  { %307 = dma.done.wait [#allocation4], 16 }
   0x3   :  { %308 = vsyncadd [#allocation4], 4294967280 }
   0x4   :  { %13 = sfence }
   0x5   :  { %14 = vsyncpa [#allocation8], 0 }
   0x6   :  { %15 = vsyncpa [#allocation9], 0  ;;  %s316_s18 = smov [#allocation7]  }
   0x7   :  { %s23_s19 = sshll.u32 %s316_s18, 4  ;;  %s24_s19 = int_to_ptr.vmem [resolvable:$true] %s23_s19 }
   0x8   :  { %s253_s20 = scalar_lea.vmem %s24_s19, 256  ;;  %p258_p1 = scmp.lt.s32.totalorder %s24_s19, %s24_s19 }
   0x9   :  { %p254_p0 = scmp.ne.s32.totalorder %s24_s19, %s253_s20  ;;  %p259_p2 = scmp.lt.s32.totalorder %s253_s20, %s253_s20 }
   0xb   :  { %p260_p3 = por %p259_p2, %p258_p1 }
   0xd   :  { %p261_p4 = pnand %p260_p3, %p254_p0 }
   0xf   :  { %264 = shalt.err (!%p261_p4)
}
  0x10   :  { %s317_s21 = smov 128   ;;  %s318_s22 = smov 8  }
  0x11   :  { %29 = dma.hbm_to_vmem [thread:$0]  %s421_s2, 256, %s24_s19, [#allocation8], %s317_s21, %s317_s21, %s318_s22  }
  0x12   :  { %309 = dma.done.wait [#allocation8], 256  }
  0x13   :  { %310 = vsyncadd [#allocation8], 4294967040  ;;  %s355_s24 = sld [smem:[#allocation5 + $0x1]]  ;;  %s319_s26 = smov [#allocation2]   ;;  %v357_v0 = vld [vmem:[#allocation7] sm:$0xff]  ;;  %v359_v1 = vld [vmem:[#allocation7 + $0x8] sm:$0xff] }
  0x14   :  { %s33_s25 = sld [smem:[#allocation5]]  ;;  %s45_s27 = sshll.u32 %s319_s26, 4  ;;  %v51_v2 = vmul.f32 %v357_v0, %v357_v0  ;;  %v52_v3 = vmul.f32 %v359_v1, %v359_v1  ;;  %s46_s27 = int_to_ptr.vmem [resolvable:$true] %s45_s27 }
  0x15   :  { %s267_s8 = scalar_lea.hbm %s422_s3, 33792 }
  0x16   :  { %v53_v4 = vadd.f32 %v52_v3, %v51_v2 }
  0x1a   :  { %s213_s28 = sshll.u32 %s33_s25, 4 }
  0x1b   :  { %s37_s30 = scalar_lea.hbm %s422_s3, %s213_s28 }
  0x1c   :  { %s265_s5 = scalar_lea.hbm %s37_s30, 256  ;;  %p268_p6 = scmp.lt.s32.totalorder %s37_s30, %s422_s3 }
  0x1d   :  { %p266_p5 = scmp.ne.s32.totalorder %s37_s30, %s265_s5  ;;  %p269_p7 = scmp.lt.s32.totalorder %s267_s8, %s265_s5 }
  0x1f   :  { %p270_p8 = por %p269_p7, %p268_p6 }
  0x21   :  { %p271_p9 = pnand %p270_p8, %p266_p5 }
  0x23   :  { %274 = shalt.err (!%p271_p9)  }
  0x24   :  { %s275_s11 = scalar_lea.vmem %s46_s27, 256  ;;  %p280_p11 = scmp.lt.s32.totalorder %s46_s27, %s46_s27 }
  0x25   :  { %p276_p10 = scmp.ne.s32.totalorder %s46_s27, %s275_s11  ;;  %p281_p12 = scmp.lt.s32.totalorder %s275_s11, %s275_s11 }
  0x27   :  { %p282_p13 = por %p281_p12, %p280_p11 }
  0x29   :  { %p283_p0 = pnand %p282_p13, %p276_p10 }
  0x2b   :  { %286 = shalt.err (!%p283_p0)  }
  0x2c   :  { %48 = dma.hbm_to_vmem [thread:$0]  %s37_s30, 256, %s46_s27, [#allocation3]  ;;  %v54_v5 = vrot.slane %v53_v4, 4 }
  0x2e   :  { %v55_v6 = vadd.f32 %v54_v5, %v53_v4 }
  0x30   :  { %v56_v7 = vrot.slane %v55_v6, 2 }
  0x32   :  { %v57_v8 = vadd.f32 %v56_v7, %v55_v6 }
  0x34   :  { %v58_v9 = vrot.slane %v57_v8, 1 }
  0x36   :  { %v59_v10 = vadd.f32 %v58_v9, %v57_v8 }
  0x37   :  { %311 = dma.done.wait [#allocation3], 256 }
  0x38   :  { %312 = vsyncadd [#allocation3], 4294967040  ;;  %v72_v11 = vlaneseq  ;;  %vm104_vm0 = vcmask 1040384   ;;  %v79_v19 = vstv %s355_s24  ;;  %v387_v22 = vld [vmem:[#allocation2] sm:$0xff]  ;;  %v393_v27 = vld [vmem:[#allocation2 + $0x8] sm:$0xff] }
  0x39   :  { %v64_v26 = vmul.f32 %v387_v22, %v387_v22 }
  0x3a   :  { %v75_v12 = vand.u32 127, %v72_v11  ;;  %v73_v13 = vshrl.u32 %v72_v11, 7 }
  0x3b   :  { %v65_v28 = vrot.slane %v64_v26, 4 }
  0x3c   :  { %v94_v14 = vand.u32 1, %v75_v12  ;;  %v76_v15 = vadd.s32 8, %v73_v13 }
  0x3d   :  { %v66_v30 = vadd.f32 %v65_v28, %v64_v26  ;;  %v138_v26 = vstv %s420_s1  ;;  %s320_s1 = smov [#allocation10]  }
  0x3e   :  { %vm374_vm1 = vcmp.eq.s32.totalorder %v94_v14, 0  ;;  %v77_v17 = vmul.u32 128, %v76_v15  ;;  %vm378_vm2 = vcmp.eq.s32.totalorder %v94_v14, 1  ;;  %s192_s17 = sshll.u32 %s320_s1, 4  ;;  %s193_s17 = int_to_ptr.vmem [resolvable:$true] %s192_s17 }
  0x3f   :  { %v103_v20 = vsel %vm374_vm1, %v59_v10, 0.0  ;;  %v143_v21 = vsel %vm378_vm2, %v59_v10, 0.0  ;;  %v67_v32 = vrot.slane %v66_v30, 2  ;;  %s287_s18 = scalar_lea.vmem %s193_s17, 256  ;;  %p292_p2 = scmp.lt.s32.totalorder %s193_s17, %s193_s17 }
  0x40   :  { %v105_v23 = vsel %vm104_vm0, %v103_v20, 0.0  ;;  %v78_v24 = vadd.s32 %v77_v17, %v75_v12  ;;  %v144_v25 = vsel %vm104_vm0, %v143_v21, 0.0  ;;  %p288_p1 = scmp.ne.s32.totalorder %s193_s17, %s287_s18  ;;  %p293_p3 = scmp.lt.s32.totalorder %s287_s18, %s287_s18 }
  0x41   :  { %106 = vadd.xlane.f32.xlu0 %v105_v23  ;;  %145 = vadd.xlane.f32.xlu1 %v144_v25  ;;  %v68_v34 = vadd.f32 %v67_v32, %v66_v30 }
  0x42   :  { %vm80_vm3 = vcmp.lt.s32.totalorder %v78_v24, %v79_v19  ;;  %p294_p4 = por %p293_p3, %p292_p2 }
  0x43   :  { %v81_v29 = vsel %vm80_vm3, %v393_v27, 0.0  ;;  %v69_v36 = vrot.slane %v68_v34, 1 }
  0x44   :  { %v82_v31 = vmul.f32 %v81_v29, %v81_v29  ;;  %p295_p5 = pnand %p294_p4, %p288_p1 }
  0x45   :  { %v70_v39 = vadd.f32 %v69_v36, %v68_v34 }
  0x46   :  { %v83_v33 = vrot.slane %v82_v31, 4 }
  0x48   :  { %v84_v35 = vadd.f32 %v83_v33, %v82_v31 }
  0x4a   :  { %v85_v37 = vrot.slane %v84_v35, 2 }
  0x4c   :  { %v86_v38 = vadd.f32 %v85_v37, %v84_v35 }
  0x4e   :  { %v87_v40 = vrot.slane %v86_v38, 1 }
  0x50   :  { %v88_v41 = vadd.f32 %v87_v40, %v86_v38 }
  0x52   :  { %v89_v42 = vadd.f32 %v88_v41, %v70_v39 }
  0x54   :  { %v155_v43 = vsel %vm378_vm2, %v89_v42, 0.0  ;;  %v116_v44 = vsel %vm374_vm1, %v89_v42, 0.0 }
  0x55   :  { %v156_v45 = vsel %vm104_vm0, %v155_v43, 0.0  ;;  %v117_v46 = vsel %vm104_vm0, %v116_v44, 0.0 }
  0x56   :  { %157 = vadd.xlane.f32.xlu1 %v156_v45  ;;  %118 = vadd.xlane.f32.xlu0 %v117_v46 }
  0xca   :  { %v107_v47 = vpop.xlane.xlu0 %106  ;;  %v146_v53 = vpop.xlane.xlu1 %145 }
  0xcb   :  { %v108_v48 = vrot.slane %v107_v47, 4  ;;  %v147_v55 = vrot.slane %v146_v53, 4 }
  0xcd   :  { %v109_v49 = vadd.f32 %v108_v48, %v107_v47  ;;  %v148_v56 = vadd.f32 %v147_v55, %v146_v53 }
  0xcf   :  { %v110_v50 = vrot.slane %v109_v49, 2  ;;  %v149_v57 = vrot.slane %v148_v56, 2 }
  0xd1   :  { %v111_v51 = vadd.f32 %v110_v50, %v109_v49  ;;  %v150_v2 = vadd.f32 %v149_v57, %v148_v56 }
  0xd3   :  { %v112_v52 = vrot.slane %v111_v51, 1  ;;  %v151_v7 = vrot.slane %v150_v2, 1 }
  0xd5   :  { %v113_v54 = vadd.f32 %v112_v52, %v111_v51  ;;  %v152_v12 = vadd.f32 %v151_v7, %v150_v2 }
  0xd7   :  { %215 = vpush %v113_v54 }
  0xdf   :  { %v158_v58 = vpop.xlane.xlu1 %157  ;;  %v119_v59 = vpop.xlane.xlu0 %118 }
  0xe0   :  { %v159_v60 = vrot.slane %v158_v58, 4  ;;  %v120_v61 = vrot.slane %v119_v59, 4 }
  0xe2   :  { %v160_v62 = vadd.f32 %v159_v60, %v158_v58  ;;  %v121_v63 = vadd.f32 %v120_v61, %v119_v59 }
  0xe4   :  { %v161_v3 = vrot.slane %v160_v62, 2  ;;  %v122_v4 = vrot.slane %v121_v63, 2 }
  0xe6   :  { %v162_v5 = vadd.f32 %v161_v3, %v160_v62  ;;  %v123_v6 = vadd.f32 %v122_v4, %v121_v63 }
  0xe8   :  { %v124_v8 = vrot.slane %v123_v6, 1  ;;  %v163_v9 = vrot.slane %v162_v5, 1 }
  0xea   :  { %v125_v10 = vadd.f32 %v124_v8, %v123_v6  ;;  %v164_v11 = vadd.f32 %v163_v9, %v162_v5 }
  0xec   :  { %217 = vpush %v125_v10 }
  0xed   :  { %219 = vpush %v152_v12 }
  0xee   :  { %221 = vpush %v164_v11 }
 0x108   :  { %s216_s3 = spop %215 }
 0x109   :  { %v115_v13 = vstv %s216_s3 }
 0x10a   :  { %229 = vrsqrt.f32 %v115_v13  ;;  %vm131_vm4 = vcmp.eq.f32.partialorder %v115_v13, inf  ;;  %v134_v23 = vand.u32 2147483648, %v115_v13  ;;  %vm133_vm5 = vcmp.eq.f32.partialorder %v115_v13, 0.0 }
 0x117   :  { %v230_v19 = vpop.eup %229 }
 0x118   :  { %v130_v20 = vmul.f32 %v230_v19, %v115_v13 }
 0x11a   :  { %v132_v21 = vsel %vm131_vm4, %v115_v13, %v130_v20 }
 0x11b   :  { %v135_v25 = vsel %vm133_vm5, %v134_v23, %v132_v21 }
 0x11d   :  { %s218_s12 = spop %217 }
 0x11e   :  { %v127_v14 = vstv %s218_s12  ;;  %s220_s13 = spop %219 }
 0x11f   :  { %231 = vrsqrt.f32 %v127_v14  ;;  %v154_v15 = vstv %s220_s13  ;;  %s222_s14 = spop %221  ;;  %vm128_vm8 = vcmp.gt.f32.partialorder %v127_v14, 0.0 }
 0x120   :  { %233 = vrsqrt.f32 %v154_v15  ;;  %v166_v17 = vstv %s222_s14  ;;  %vm170_vm6 = vcmp.eq.f32.partialorder %v154_v15, inf  ;;  %v173_v32 = vand.u32 2147483648, %v154_v15 }
 0x121   :  { %235 = vrsqrt.f32 %v166_v17  ;;  %vm172_vm7 = vcmp.eq.f32.partialorder %v154_v15, 0.0  ;;  %vm167_vm9 = vcmp.gt.f32.partialorder %v166_v17, 0.0 }
 0x12c   :  { %v232_v24 = vpop.eup %231 }
 0x12d   :  { %v234_v28 = vpop.eup %233  ;;  %v137_v29 = vmul.f32 %v232_v24, %v135_v25 }
 0x12e   :  { %v169_v30 = vmul.f32 %v234_v28, %v154_v15  ;;  %v236_v34 = vpop.eup %235 }
 0x12f   :  { %v139_v31 = vmul.f32 %v138_v26, %v137_v29 }
 0x130   :  { %v171_v33 = vsel %vm170_vm6, %v154_v15, %v169_v30 }
 0x131   :  { %v174_v35 = vsel %vm172_vm7, %v173_v32, %v171_v33  ;;  %v140_v37 = vsel %vm128_vm8, %v139_v31, 0.0 }
 0x132   :  { %v176_v36 = vmul.f32 %v236_v34, %v174_v35  ;;  %v141_v39 = vsel %vm374_vm1, %v140_v37, 0.0 }
 0x134   :  { %v177_v38 = vmul.f32 %v176_v36, %v138_v26 }
 0x136   :  { %v178_v40 = vsel %vm167_vm9, %v177_v38, 0.0 }
 0x137   :  { %v179_v41 = vsel %vm378_vm2, %v178_v40, %v141_v39 }
 0x138   :  { %v181_v42 = vmul.f32 %v179_v41, %v387_v22  ;;  %v182_v43 = vmul.f32 %v179_v41, %v393_v27 }
 0x13a   :  { %v183_v44 = vadd.f32 %v181_v42, %v357_v0  ;;  %v184_v45 = vadd.f32 %v182_v43, %v359_v1 }
 0x13c   :  { %185 = vst [vmem:[#allocation10] sm:$0xff] %v183_v44  ;;  %186 = vst [vmem:[#allocation10 + $0x8] sm:$0xff] %v184_v45 }
 0x13d   :  { %298 = shalt.err (!%p295_p5)
}
 0x13e   :  { %198 = dma.vmem_to_hbm [thread:$0]  %s193_s17, 256, %s423_s4, [#allocation9], %s317_s21, %s317_s21, %s318_s22  }
 0x13f   :  { %313 = dma.done.wait [#allocation9], 256  }
 0x140   :  { %314 = vsyncadd [#allocation9], 4294967040 }
 0x141   :  { %202 = vsyncpa [#allocation8], 1 }
 0x142   :  { %203 = vsyncpa [#allocation9], 1 }
 0x143   :  { %204 = vsyncmov [#allocation3] }
 0x146   :  { %s205_s0 = vpop.sfrf %204 }
 0x147   :  { %p214_p6 = scmp.ne.s32.totalorder %s205_s0, 0 }
 0x149   :  { %209 = shalt.err (%p214_p6)  }

</bundles_post_ra>
